<compile_context>
chip_gen: v6e
topology: v6e:2x2x1
jax: 0.10.0
libtpu: 0.0.40
codegen_flags: <defaults>
</compile_context>

<pallas_src>
import math

import jax
import jax.numpy as jnp
from jax.experimental import pallas as pl
from jax.experimental.pallas import tpu as pltpu


def lstm_kernel(tok_ref, emb_ref, wih_ref, whh_ref, b_ref, wout_ref, bout_ref, out_ref):
    """Fused Embedding -> LSTM -> Linear forward (single invocation, no grid).

    tok_ref  : (B, T)    int32, SMEM -- token ids (drive dynamic embedding-row loads)
    emb_ref  : (V, H)    f32,  VMEM -- embedding table (row 0 = padding row, zeroed)
    wih_ref  : (H, 4H)   f32,  VMEM -- W_ih^T
    whh_ref  : (H, 4H)   f32,  VMEM -- W_hh^T
    b_ref    : (1, 4H)   f32,  VMEM -- b_ih + b_hh
    wout_ref : (H, O)    f32,  VMEM -- W_out^T
    bout_ref : (1, O)    f32,  VMEM -- b_out
    out_ref  : (B, T, O) f32,  VMEM -- batch-major outputs (PyTorch batch_first)
    """
    B, T, O = out_ref.shape
    H = emb_ref.shape[1]

    # ---- Phase 0: fused embedding gather (time-major rows r = t*B + b) ----
    rows = []
    for t in range(T):
        for b in range(B):
            tok = tok_ref[b, t]                           # scalar id from SMEM
            rows.append(emb_ref[pl.ds(tok, 1), :])        # dynamic (1, H) row load
    x_all = jnp.concatenate(rows, axis=0)                 # (T*B, H), 2-D, time-major

    # ---- Phase 1 (non-recurrent): input projection for ALL timesteps at once ----
    # (T*B, H) @ (H, 4H) + bias -- one well-shaped MXU matmul instead of T tiny ones.
    xg = jnp.dot(x_all, wih_ref[...], preferred_element_type=jnp.float32) + b_ref[...]
    whh = whh_ref[...]                                    # hoisted: loaded once

    # ---- Phase 2: serial recurrence; only h @ W_hh^T on the critical path ----
    h = jnp.zeros((B, H), jnp.float32)
    c = jnp.zeros((B, H), jnp.float32)
    hs = []
    for t in range(T):                                    # statically unrolled, T tiny
        gates = xg[t * B:(t + 1) * B, :] + jnp.dot(h, whh,
                                                   preferred_element_type=jnp.float32)
        # One sigmoid + one tanh over the whole (B, 4H) gate vreg, then take lanes
        # (PyTorch gate order i, f, g, o) -> fewer EUP pushes on the serial path.
        sig = jax.nn.sigmoid(gates)
        th = jnp.tanh(gates)
        i_g = sig[:, 0 * H:1 * H]
        f_g = sig[:, 1 * H:2 * H]
        g_g = th[:, 2 * H:3 * H]
        o_g = sig[:, 3 * H:4 * H]
        c = f_g * c + i_g * g_g
        h = o_g * jnp.tanh(c)
        hs.append(h)                                      # stays in vregs, no store

    # ---- Phase 3: deferred output projection, emitted batch-major (no wrapper op) ----
    wout = wout_ref[...]
    bout = bout_ref[...]
    for b in range(B):
        h_b = jnp.concatenate([hs[t][b:b + 1, :] for t in range(T)], axis=0)  # (T, H)
        out_ref[b] = (jnp.dot(h_b, wout, preferred_element_type=jnp.float32)
                      + bout).astype(out_ref.dtype)


def lstm_model_forward(tokens, params):
    """tokens: (B, T) int32 -> (B, T, output_size) float32 (batch_first, like PyTorch).

    Single pallas_call; the wrapper performs no gather / transpose / slice dispatches.
    """
    B, T = tokens.shape
    O = params["w_out"].shape[1]

    vmem = pltpu.MemorySpace.VMEM
    smem = pltpu.MemorySpace.SMEM

    # Whole-array-resident VMEM specs: ~50 KB total at these sizes.
    # TODO(synk): when H/B/T scale (esp. v7x's 64 MiB VMEM), switch weights/xg to bf16
    # or chunk T with pltpu.emit_pipeline + explicit vmem_limit_bytes; at large B add a
    # "parallel" batch grid axis so v7x's 2 TensorCores split independent sequences.
    return pl.pallas_call(
        lstm_kernel,
        out_shape=jax.ShapeDtypeStruct((B, T, O), jnp.float32),
        in_specs=[
            pl.BlockSpec(memory_space=smem),    # token ids
            pl.BlockSpec(memory_space=vmem),    # embedding table
            pl.BlockSpec(memory_space=vmem),    # W_ih^T
            pl.BlockSpec(memory_space=vmem),    # W_hh^T
            pl.BlockSpec(memory_space=vmem),    # b_ih + b_hh
            pl.BlockSpec(memory_space=vmem),    # W_out^T
            pl.BlockSpec(memory_space=vmem),    # b_out
        ],
        out_specs=pl.BlockSpec(memory_space=vmem),
    )(tokens, params["embedding"], params["w_ih_t"], params["w_hh_t"],
      params["b"], params["w_out"], params["b_out"])


def init_params(key, vocab_size, hidden_size, output_size):
    """Deterministic init matching PyTorch parameter shapes/semantics."""
    H, O, V = hidden_size, output_size, vocab_size
    k_lstm = 1.0 / math.sqrt(H)
    k_lin = 1.0 / math.sqrt(H)
    keys = jax.random.split(key, 8)

    embedding = jax.random.normal(keys[0], (V, H), jnp.float32)
    embedding = embedding.at[0].set(0.0)                   # padding_idx=0

    w_ih = jax.random.uniform(keys[1], (4 * H, H), jnp.float32, -k_lstm, k_lstm)
    w_hh = jax.random.uniform(keys[2], (4 * H, H), jnp.float32, -k_lstm, k_lstm)
    b_ih = jax.random.uniform(keys[3], (4 * H,), jnp.float32, -k_lstm, k_lstm)
    b_hh = jax.random.uniform(keys[4], (4 * H,), jnp.float32, -k_lstm, k_lstm)

    w_lin = jax.random.uniform(keys[5], (O, H), jnp.float32, -k_lin, k_lin)
    b_lin = jax.random.uniform(keys[6], (O,), jnp.float32, -k_lin, k_lin)

    return {
        "embedding": embedding,
        "w_ih_t": w_ih.T,                       # (H, 4H)
        "w_hh_t": w_hh.T,                       # (H, 4H)
        "b": (b_ih + b_hh).reshape(1, 4 * H),   # (1, 4H)
        "w_out": w_lin.T,                       # (H, O)
        "b_out": b_lin.reshape(1, O),           # (1, O)
    }


if __name__ == "__main__":
    vocab_size, hidden_size, output_size = 50, 32, 16
    batch, seq = 2, 8

    key = jax.random.PRNGKey(0)
    k_param, k_tok = jax.random.split(key)
    params = init_params(k_param, vocab_size, hidden_size, output_size)
    tokens = jax.random.randint(k_tok, (batch, seq), 0, vocab_size, dtype=jnp.int32)

    forward = jax.jit(lstm_model_forward)
    out = forward(tokens, params)
    jax.block_until_ready(out)
    assert out.shape == (batch, seq, output_size), out.shape
    print("KERNEL_OK")
</pallas_src>

<mosaic_0001>
module attributes {stable_mosaic.version = 11 : i64} {
  func.func @lstm_kernel(%arg0: memref<2x8xi32, #tpu.memory_space<smem>>, %arg1: memref<50x32xf32, #tpu.memory_space<vmem>>, %arg2: memref<32x128xf32, #tpu.memory_space<vmem>>, %arg3: memref<32x128xf32, #tpu.memory_space<vmem>>, %arg4: memref<1x128xf32, #tpu.memory_space<vmem>>, %arg5: memref<32x16xf32, #tpu.memory_space<vmem>>, %arg6: memref<1x16xf32, #tpu.memory_space<vmem>>, %arg7: memref<2x8x16xf32, #tpu.memory_space<vmem>>) attributes {dimension_semantics = [], scalar_prefetch = 0 : i64, scratch_operands = 0 : i64, tpu.core_type = #tpu.core_type<tc>} {
    %c0 = arith.constant 0 : index
    %c0_0 = arith.constant 0 : index
    %0 = memref.load %arg0[%c0, %c0_0] : memref<2x8xi32, #tpu.memory_space<smem>>
    %1 = arith.index_cast %0 : i32 to index
    %c0_1 = arith.constant 0 : index
    %2 = vector.load %arg1[%1, %c0_1] : memref<50x32xf32, #tpu.memory_space<vmem>>, vector<1x32xf32>
    %c1 = arith.constant 1 : index
    %c0_2 = arith.constant 0 : index
    %3 = memref.load %arg0[%c1, %c0_2] : memref<2x8xi32, #tpu.memory_space<smem>>
    %4 = arith.index_cast %3 : i32 to index
    %c0_3 = arith.constant 0 : index
    %5 = vector.load %arg1[%4, %c0_3] : memref<50x32xf32, #tpu.memory_space<vmem>>, vector<1x32xf32>
    %c0_4 = arith.constant 0 : index
    %c1_5 = arith.constant 1 : index
    %6 = memref.load %arg0[%c0_4, %c1_5] : memref<2x8xi32, #tpu.memory_space<smem>>
    %7 = arith.index_cast %6 : i32 to index
    %c0_6 = arith.constant 0 : index
    %8 = vector.load %arg1[%7, %c0_6] : memref<50x32xf32, #tpu.memory_space<vmem>>, vector<1x32xf32>
    %c1_7 = arith.constant 1 : index
    %c1_8 = arith.constant 1 : index
    %9 = memref.load %arg0[%c1_7, %c1_8] : memref<2x8xi32, #tpu.memory_space<smem>>
    %10 = arith.index_cast %9 : i32 to index
    %c0_9 = arith.constant 0 : index
    %11 = vector.load %arg1[%10, %c0_9] : memref<50x32xf32, #tpu.memory_space<vmem>>, vector<1x32xf32>
    %c0_10 = arith.constant 0 : index
    %c2 = arith.constant 2 : index
    %12 = memref.load %arg0[%c0_10, %c2] : memref<2x8xi32, #tpu.memory_space<smem>>
    %13 = arith.index_cast %12 : i32 to index
    %c0_11 = arith.constant 0 : index
    %14 = vector.load %arg1[%13, %c0_11] : memref<50x32xf32, #tpu.memory_space<vmem>>, vector<1x32xf32>
    %c1_12 = arith.constant 1 : index
    %c2_13 = arith.constant 2 : index
    %15 = memref.load %arg0[%c1_12, %c2_13] : memref<2x8xi32, #tpu.memory_space<smem>>
    %16 = arith.index_cast %15 : i32 to index
    %c0_14 = arith.constant 0 : index
    %17 = vector.load %arg1[%16, %c0_14] : memref<50x32xf32, #tpu.memory_space<vmem>>, vector<1x32xf32>
    %c0_15 = arith.constant 0 : index
    %c3 = arith.constant 3 : index
    %18 = memref.load %arg0[%c0_15, %c3] : memref<2x8xi32, #tpu.memory_space<smem>>
    %19 = arith.index_cast %18 : i32 to index
    %c0_16 = arith.constant 0 : index
    %20 = vector.load %arg1[%19, %c0_16] : memref<50x32xf32, #tpu.memory_space<vmem>>, vector<1x32xf32>
    %c1_17 = arith.constant 1 : index
    %c3_18 = arith.constant 3 : index
    %21 = memref.load %arg0[%c1_17, %c3_18] : memref<2x8xi32, #tpu.memory_space<smem>>
    %22 = arith.index_cast %21 : i32 to index
    %c0_19 = arith.constant 0 : index
    %23 = vector.load %arg1[%22, %c0_19] : memref<50x32xf32, #tpu.memory_space<vmem>>, vector<1x32xf32>
    %c0_20 = arith.constant 0 : index
    %c4 = arith.constant 4 : index
    %24 = memref.load %arg0[%c0_20, %c4] : memref<2x8xi32, #tpu.memory_space<smem>>
    %25 = arith.index_cast %24 : i32 to index
    %c0_21 = arith.constant 0 : index
    %26 = vector.load %arg1[%25, %c0_21] : memref<50x32xf32, #tpu.memory_space<vmem>>, vector<1x32xf32>
    %c1_22 = arith.constant 1 : index
    %c4_23 = arith.constant 4 : index
    %27 = memref.load %arg0[%c1_22, %c4_23] : memref<2x8xi32, #tpu.memory_space<smem>>
    %28 = arith.index_cast %27 : i32 to index
    %c0_24 = arith.constant 0 : index
    %29 = vector.load %arg1[%28, %c0_24] : memref<50x32xf32, #tpu.memory_space<vmem>>, vector<1x32xf32>
    %c0_25 = arith.constant 0 : index
    %c5 = arith.constant 5 : index
    %30 = memref.load %arg0[%c0_25, %c5] : memref<2x8xi32, #tpu.memory_space<smem>>
    %31 = arith.index_cast %30 : i32 to index
    %c0_26 = arith.constant 0 : index
    %32 = vector.load %arg1[%31, %c0_26] : memref<50x32xf32, #tpu.memory_space<vmem>>, vector<1x32xf32>
    %c1_27 = arith.constant 1 : index
    %c5_28 = arith.constant 5 : index
    %33 = memref.load %arg0[%c1_27, %c5_28] : memref<2x8xi32, #tpu.memory_space<smem>>
    %34 = arith.index_cast %33 : i32 to index
    %c0_29 = arith.constant 0 : index
    %35 = vector.load %arg1[%34, %c0_29] : memref<50x32xf32, #tpu.memory_space<vmem>>, vector<1x32xf32>
    %c0_30 = arith.constant 0 : index
    %c6 = arith.constant 6 : index
    %36 = memref.load %arg0[%c0_30, %c6] : memref<2x8xi32, #tpu.memory_space<smem>>
    %37 = arith.index_cast %36 : i32 to index
    %c0_31 = arith.constant 0 : index
    %38 = vector.load %arg1[%37, %c0_31] : memref<50x32xf32, #tpu.memory_space<vmem>>, vector<1x32xf32>
    %c1_32 = arith.constant 1 : index
    %c6_33 = arith.constant 6 : index
    %39 = memref.load %arg0[%c1_32, %c6_33] : memref<2x8xi32, #tpu.memory_space<smem>>
    %40 = arith.index_cast %39 : i32 to index
    %c0_34 = arith.constant 0 : index
    %41 = vector.load %arg1[%40, %c0_34] : memref<50x32xf32, #tpu.memory_space<vmem>>, vector<1x32xf32>
    %c0_35 = arith.constant 0 : index
    %c7 = arith.constant 7 : index
    %42 = memref.load %arg0[%c0_35, %c7] : memref<2x8xi32, #tpu.memory_space<smem>>
    %43 = arith.index_cast %42 : i32 to index
    %c0_36 = arith.constant 0 : index
    %44 = vector.load %arg1[%43, %c0_36] : memref<50x32xf32, #tpu.memory_space<vmem>>, vector<1x32xf32>
    %c1_37 = arith.constant 1 : index
    %c7_38 = arith.constant 7 : index
    %45 = memref.load %arg0[%c1_37, %c7_38] : memref<2x8xi32, #tpu.memory_space<smem>>
    %46 = arith.index_cast %45 : i32 to index
    %c0_39 = arith.constant 0 : index
    %47 = vector.load %arg1[%46, %c0_39] : memref<50x32xf32, #tpu.memory_space<vmem>>, vector<1x32xf32>
    %48 = tpu.concatenate %2, %5, %8, %11, %14, %17, %20, %23, %26, %29, %32, %35, %38, %41, %44, %47 in 0 : vector<1x32xf32>, vector<1x32xf32>, vector<1x32xf32>, vector<1x32xf32>, vector<1x32xf32>, vector<1x32xf32>, vector<1x32xf32>, vector<1x32xf32>, vector<1x32xf32>, vector<1x32xf32>, vector<1x32xf32>, vector<1x32xf32>, vector<1x32xf32>, vector<1x32xf32>, vector<1x32xf32>, vector<1x32xf32> -> vector<16x32xf32>
    %c0_40 = arith.constant 0 : index
    %c0_41 = arith.constant 0 : index
    %49 = vector.load %arg2[%c0_40, %c0_41] : memref<32x128xf32, #tpu.memory_space<vmem>>, vector<32x128xf32>
    %cst = arith.constant dense<0.000000e+00> : vector<16x128xf32>
    %50 = tpu.matmul %48, %49, %cst {dimension_numbers = #tpu.dot_dimension_numbers<[1], [0], [0], [1], [0, 0, 1, 1], [], []>} : vector<16x32xf32>, vector<32x128xf32>, vector<16x128xf32> -> vector<16x128xf32>
    %c0_42 = arith.constant 0 : index
    %c0_43 = arith.constant 0 : index
    %51 = vector.load %arg4[%c0_42, %c0_43] : memref<1x128xf32, #tpu.memory_space<vmem>>, vector<1x128xf32>
    %52 = vector.broadcast %51 : vector<1x128xf32> to vector<16x128xf32>
    %53 = arith.addf %50, %52 : vector<16x128xf32>
    %c0_44 = arith.constant 0 : index
    %c0_45 = arith.constant 0 : index
    %54 = vector.load %arg3[%c0_44, %c0_45] : memref<32x128xf32, #tpu.memory_space<vmem>>, vector<32x128xf32>
    %cst_46 = arith.constant 0.000000e+00 : f32
    %55 = vector.broadcast %cst_46 : f32 to vector<2x32xf32>
    %cst_47 = arith.constant 0.000000e+00 : f32
    %56 = vector.broadcast %cst_47 : f32 to vector<2x32xf32>
    %57 = vector.extract_strided_slice %53 {offsets = [0, 0], sizes = [2, 128], strides = [1, 1]} : vector<16x128xf32> to vector<2x128xf32>
    %cst_48 = arith.constant dense<0.000000e+00> : vector<2x128xf32>
    %58 = tpu.matmul %55, %54, %cst_48 {dimension_numbers = #tpu.dot_dimension_numbers<[1], [0], [0], [1], [0, 0, 1, 1], [], []>} : vector<2x32xf32>, vector<32x128xf32>, vector<2x128xf32> -> vector<2x128xf32>
    %59 = arith.addf %57, %58 : vector<2x128xf32>
    %60 = arith.negf %59 : vector<2x128xf32>
    %61 = math.exp %60 : vector<2x128xf32>
    %cst_49 = arith.constant 1.000000e+00 : f32
    %62 = vector.broadcast %cst_49 : f32 to vector<2x128xf32>
    %63 = arith.addf %62, %61 : vector<2x128xf32>
    %64 = arith.divf %62, %63 : vector<2x128xf32>
    %65 = math.tanh %59 : vector<2x128xf32>
    %66 = vector.extract_strided_slice %64 {offsets = [0, 0], sizes = [2, 32], strides = [1, 1]} : vector<2x128xf32> to vector<2x32xf32>
    %67 = vector.extract_strided_slice %64 {offsets = [0, 32], sizes = [2, 32], strides = [1, 1]} : vector<2x128xf32> to vector<2x32xf32>
    %68 = vector.extract_strided_slice %65 {offsets = [0, 64], sizes = [2, 32], strides = [1, 1]} : vector<2x128xf32> to vector<2x32xf32>
    %69 = vector.extract_strided_slice %64 {offsets = [0, 96], sizes = [2, 32], strides = [1, 1]} : vector<2x128xf32> to vector<2x32xf32>
    %70 = arith.mulf %67, %56 : vector<2x32xf32>
    %71 = arith.mulf %66, %68 : vector<2x32xf32>
    %72 = arith.addf %70, %71 : vector<2x32xf32>
    %73 = math.tanh %72 : vector<2x32xf32>
    %74 = arith.mulf %69, %73 : vector<2x32xf32>
    %75 = vector.extract_strided_slice %53 {offsets = [2, 0], sizes = [2, 128], strides = [1, 1]} : vector<16x128xf32> to vector<2x128xf32>
    %cst_50 = arith.constant dense<0.000000e+00> : vector<2x128xf32>
    %76 = tpu.matmul %74, %54, %cst_50 {dimension_numbers = #tpu.dot_dimension_numbers<[1], [0], [0], [1], [0, 0, 1, 1], [], []>} : vector<2x32xf32>, vector<32x128xf32>, vector<2x128xf32> -> vector<2x128xf32>
    %77 = arith.addf %75, %76 : vector<2x128xf32>
    %78 = arith.negf %77 : vector<2x128xf32>
    %79 = math.exp %78 : vector<2x128xf32>
    %cst_51 = arith.constant 1.000000e+00 : f32
    %80 = vector.broadcast %cst_51 : f32 to vector<2x128xf32>
    %81 = arith.addf %80, %79 : vector<2x128xf32>
    %82 = arith.divf %80, %81 : vector<2x128xf32>
    %83 = math.tanh %77 : vector<2x128xf32>
    %84 = vector.extract_strided_slice %82 {offsets = [0, 0], sizes = [2, 32], strides = [1, 1]} : vector<2x128xf32> to vector<2x32xf32>
    %85 = vector.extract_strided_slice %82 {offsets = [0, 32], sizes = [2, 32], strides = [1, 1]} : vector<2x128xf32> to vector<2x32xf32>
    %86 = vector.extract_strided_slice %83 {offsets = [0, 64], sizes = [2, 32], strides = [1, 1]} : vector<2x128xf32> to vector<2x32xf32>
    %87 = vector.extract_strided_slice %82 {offsets = [0, 96], sizes = [2, 32], strides = [1, 1]} : vector<2x128xf32> to vector<2x32xf32>
    %88 = arith.mulf %85, %72 : vector<2x32xf32>
    %89 = arith.mulf %84, %86 : vector<2x32xf32>
    %90 = arith.addf %88, %89 : vector<2x32xf32>
    %91 = math.tanh %90 : vector<2x32xf32>
    %92 = arith.mulf %87, %91 : vector<2x32xf32>
    %93 = vector.extract_strided_slice %53 {offsets = [4, 0], sizes = [2, 128], strides = [1, 1]} : vector<16x128xf32> to vector<2x128xf32>
    %cst_52 = arith.constant dense<0.000000e+00> : vector<2x128xf32>
    %94 = tpu.matmul %92, %54, %cst_52 {dimension_numbers = #tpu.dot_dimension_numbers<[1], [0], [0], [1], [0, 0, 1, 1], [], []>} : vector<2x32xf32>, vector<32x128xf32>, vector<2x128xf32> -> vector<2x128xf32>
    %95 = arith.addf %93, %94 : vector<2x128xf32>
    %96 = arith.negf %95 : vector<2x128xf32>
    %97 = math.exp %96 : vector<2x128xf32>
    %cst_53 = arith.constant 1.000000e+00 : f32
    %98 = vector.broadcast %cst_53 : f32 to vector<2x128xf32>
    %99 = arith.addf %98, %97 : vector<2x128xf32>
    %100 = arith.divf %98, %99 : vector<2x128xf32>
    %101 = math.tanh %95 : vector<2x128xf32>
    %102 = vector.extract_strided_slice %100 {offsets = [0, 0], sizes = [2, 32], strides = [1, 1]} : vector<2x128xf32> to vector<2x32xf32>
    %103 = vector.extract_strided_slice %100 {offsets = [0, 32], sizes = [2, 32], strides = [1, 1]} : vector<2x128xf32> to vector<2x32xf32>
    %104 = vector.extract_strided_slice %101 {offsets = [0, 64], sizes = [2, 32], strides = [1, 1]} : vector<2x128xf32> to vector<2x32xf32>
    %105 = vector.extract_strided_slice %100 {offsets = [0, 96], sizes = [2, 32], strides = [1, 1]} : vector<2x128xf32> to vector<2x32xf32>
    %106 = arith.mulf %103, %90 : vector<2x32xf32>
    %107 = arith.mulf %102, %104 : vector<2x32xf32>
    %108 = arith.addf %106, %107 : vector<2x32xf32>
    %109 = math.tanh %108 : vector<2x32xf32>
    %110 = arith.mulf %105, %109 : vector<2x32xf32>
    %111 = vector.extract_strided_slice %53 {offsets = [6, 0], sizes = [2, 128], strides = [1, 1]} : vector<16x128xf32> to vector<2x128xf32>
    %cst_54 = arith.constant dense<0.000000e+00> : vector<2x128xf32>
    %112 = tpu.matmul %110, %54, %cst_54 {dimension_numbers = #tpu.dot_dimension_numbers<[1], [0], [0], [1], [0, 0, 1, 1], [], []>} : vector<2x32xf32>, vector<32x128xf32>, vector<2x128xf32> -> vector<2x128xf32>
    %113 = arith.addf %111, %112 : vector<2x128xf32>
    %114 = arith.negf %113 : vector<2x128xf32>
    %115 = math.exp %114 : vector<2x128xf32>
    %cst_55 = arith.constant 1.000000e+00 : f32
    %116 = vector.broadcast %cst_55 : f32 to vector<2x128xf32>
    %117 = arith.addf %116, %115 : vector<2x128xf32>
    %118 = arith.divf %116, %117 : vector<2x128xf32>
    %119 = math.tanh %113 : vector<2x128xf32>
    %120 = vector.extract_strided_slice %118 {offsets = [0, 0], sizes = [2, 32], strides = [1, 1]} : vector<2x128xf32> to vector<2x32xf32>
    %121 = vector.extract_strided_slice %118 {offsets = [0, 32], sizes = [2, 32], strides = [1, 1]} : vector<2x128xf32> to vector<2x32xf32>
    %122 = vector.extract_strided_slice %119 {offsets = [0, 64], sizes = [2, 32], strides = [1, 1]} : vector<2x128xf32> to vector<2x32xf32>
    %123 = vector.extract_strided_slice %118 {offsets = [0, 96], sizes = [2, 32], strides = [1, 1]} : vector<2x128xf32> to vector<2x32xf32>
    %124 = arith.mulf %121, %108 : vector<2x32xf32>
    %125 = arith.mulf %120, %122 : vector<2x32xf32>
    %126 = arith.addf %124, %125 : vector<2x32xf32>
    %127 = math.tanh %126 : vector<2x32xf32>
    %128 = arith.mulf %123, %127 : vector<2x32xf32>
    %129 = vector.extract_strided_slice %53 {offsets = [8, 0], sizes = [2, 128], strides = [1, 1]} : vector<16x128xf32> to vector<2x128xf32>
    %cst_56 = arith.constant dense<0.000000e+00> : vector<2x128xf32>
    %130 = tpu.matmul %128, %54, %cst_56 {dimension_numbers = #tpu.dot_dimension_numbers<[1], [0], [0], [1], [0, 0, 1, 1], [], []>} : vector<2x32xf32>, vector<32x128xf32>, vector<2x128xf32> -> vector<2x128xf32>
    %131 = arith.addf %129, %130 : vector<2x128xf32>
    %132 = arith.negf %131 : vector<2x128xf32>
    %133 = math.exp %132 : vector<2x128xf32>
    %cst_57 = arith.constant 1.000000e+00 : f32
    %134 = vector.broadcast %cst_57 : f32 to vector<2x128xf32>
    %135 = arith.addf %134, %133 : vector<2x128xf32>
    %136 = arith.divf %134, %135 : vector<2x128xf32>
    %137 = math.tanh %131 : vector<2x128xf32>
    %138 = vector.extract_strided_slice %136 {offsets = [0, 0], sizes = [2, 32], strides = [1, 1]} : vector<2x128xf32> to vector<2x32xf32>
    %139 = vector.extract_strided_slice %136 {offsets = [0, 32], sizes = [2, 32], strides = [1, 1]} : vector<2x128xf32> to vector<2x32xf32>
    %140 = vector.extract_strided_slice %137 {offsets = [0, 64], sizes = [2, 32], strides = [1, 1]} : vector<2x128xf32> to vector<2x32xf32>
    %141 = vector.extract_strided_slice %136 {offsets = [0, 96], sizes = [2, 32], strides = [1, 1]} : vector<2x128xf32> to vector<2x32xf32>
    %142 = arith.mulf %139, %126 : vector<2x32xf32>
    %143 = arith.mulf %138, %140 : vector<2x32xf32>
    %144 = arith.addf %142, %143 : vector<2x32xf32>
    %145 = math.tanh %144 : vector<2x32xf32>
    %146 = arith.mulf %141, %145 : vector<2x32xf32>
    %147 = vector.extract_strided_slice %53 {offsets = [10, 0], sizes = [2, 128], strides = [1, 1]} : vector<16x128xf32> to vector<2x128xf32>
    %cst_58 = arith.constant dense<0.000000e+00> : vector<2x128xf32>
    %148 = tpu.matmul %146, %54, %cst_58 {dimension_numbers = #tpu.dot_dimension_numbers<[1], [0], [0], [1], [0, 0, 1, 1], [], []>} : vector<2x32xf32>, vector<32x128xf32>, vector<2x128xf32> -> vector<2x128xf32>
    %149 = arith.addf %147, %148 : vector<2x128xf32>
    %150 = arith.negf %149 : vector<2x128xf32>
    %151 = math.exp %150 : vector<2x128xf32>
    %cst_59 = arith.constant 1.000000e+00 : f32
    %152 = vector.broadcast %cst_59 : f32 to vector<2x128xf32>
    %153 = arith.addf %152, %151 : vector<2x128xf32>
    %154 = arith.divf %152, %153 : vector<2x128xf32>
    %155 = math.tanh %149 : vector<2x128xf32>
    %156 = vector.extract_strided_slice %154 {offsets = [0, 0], sizes = [2, 32], strides = [1, 1]} : vector<2x128xf32> to vector<2x32xf32>
    %157 = vector.extract_strided_slice %154 {offsets = [0, 32], sizes = [2, 32], strides = [1, 1]} : vector<2x128xf32> to vector<2x32xf32>
    %158 = vector.extract_strided_slice %155 {offsets = [0, 64], sizes = [2, 32], strides = [1, 1]} : vector<2x128xf32> to vector<2x32xf32>
    %159 = vector.extract_strided_slice %154 {offsets = [0, 96], sizes = [2, 32], strides = [1, 1]} : vector<2x128xf32> to vector<2x32xf32>
    %160 = arith.mulf %157, %144 : vector<2x32xf32>
    %161 = arith.mulf %156, %158 : vector<2x32xf32>
    %162 = arith.addf %160, %161 : vector<2x32xf32>
    %163 = math.tanh %162 : vector<2x32xf32>
    %164 = arith.mulf %159, %163 : vector<2x32xf32>
    %165 = vector.extract_strided_slice %53 {offsets = [12, 0], sizes = [2, 128], strides = [1, 1]} : vector<16x128xf32> to vector<2x128xf32>
    %cst_60 = arith.constant dense<0.000000e+00> : vector<2x128xf32>
    %166 = tpu.matmul %164, %54, %cst_60 {dimension_numbers = #tpu.dot_dimension_numbers<[1], [0], [0], [1], [0, 0, 1, 1], [], []>} : vector<2x32xf32>, vector<32x128xf32>, vector<2x128xf32> -> vector<2x128xf32>
    %167 = arith.addf %165, %166 : vector<2x128xf32>
    %168 = arith.negf %167 : vector<2x128xf32>
    %169 = math.exp %168 : vector<2x128xf32>
    %cst_61 = arith.constant 1.000000e+00 : f32
    %170 = vector.broadcast %cst_61 : f32 to vector<2x128xf32>
    %171 = arith.addf %170, %169 : vector<2x128xf32>
    %172 = arith.divf %170, %171 : vector<2x128xf32>
    %173 = math.tanh %167 : vector<2x128xf32>
    %174 = vector.extract_strided_slice %172 {offsets = [0, 0], sizes = [2, 32], strides = [1, 1]} : vector<2x128xf32> to vector<2x32xf32>
    %175 = vector.extract_strided_slice %172 {offsets = [0, 32], sizes = [2, 32], strides = [1, 1]} : vector<2x128xf32> to vector<2x32xf32>
    %176 = vector.extract_strided_slice %173 {offsets = [0, 64], sizes = [2, 32], strides = [1, 1]} : vector<2x128xf32> to vector<2x32xf32>
    %177 = vector.extract_strided_slice %172 {offsets = [0, 96], sizes = [2, 32], strides = [1, 1]} : vector<2x128xf32> to vector<2x32xf32>
    %178 = arith.mulf %175, %162 : vector<2x32xf32>
    %179 = arith.mulf %174, %176 : vector<2x32xf32>
    %180 = arith.addf %178, %179 : vector<2x32xf32>
    %181 = math.tanh %180 : vector<2x32xf32>
    %182 = arith.mulf %177, %181 : vector<2x32xf32>
    %183 = vector.extract_strided_slice %53 {offsets = [14, 0], sizes = [2, 128], strides = [1, 1]} : vector<16x128xf32> to vector<2x128xf32>
    %cst_62 = arith.constant dense<0.000000e+00> : vector<2x128xf32>
    %184 = tpu.matmul %182, %54, %cst_62 {dimension_numbers = #tpu.dot_dimension_numbers<[1], [0], [0], [1], [0, 0, 1, 1], [], []>} : vector<2x32xf32>, vector<32x128xf32>, vector<2x128xf32> -> vector<2x128xf32>
    %185 = arith.addf %183, %184 : vector<2x128xf32>
    %186 = arith.negf %185 : vector<2x128xf32>
    %187 = math.exp %186 : vector<2x128xf32>
    %cst_63 = arith.constant 1.000000e+00 : f32
    %188 = vector.broadcast %cst_63 : f32 to vector<2x128xf32>
    %189 = arith.addf %188, %187 : vector<2x128xf32>
    %190 = arith.divf %188, %189 : vector<2x128xf32>
    %191 = math.tanh %185 : vector<2x128xf32>
    %192 = vector.extract_strided_slice %190 {offsets = [0, 0], sizes = [2, 32], strides = [1, 1]} : vector<2x128xf32> to vector<2x32xf32>
    %193 = vector.extract_strided_slice %190 {offsets = [0, 32], sizes = [2, 32], strides = [1, 1]} : vector<2x128xf32> to vector<2x32xf32>
    %194 = vector.extract_strided_slice %191 {offsets = [0, 64], sizes = [2, 32], strides = [1, 1]} : vector<2x128xf32> to vector<2x32xf32>
    %195 = vector.extract_strided_slice %190 {offsets = [0, 96], sizes = [2, 32], strides = [1, 1]} : vector<2x128xf32> to vector<2x32xf32>
    %196 = arith.mulf %193, %180 : vector<2x32xf32>
    %197 = arith.mulf %192, %194 : vector<2x32xf32>
    %198 = arith.addf %196, %197 : vector<2x32xf32>
    %199 = math.tanh %198 : vector<2x32xf32>
    %200 = arith.mulf %195, %199 : vector<2x32xf32>
    %c0_64 = arith.constant 0 : index
    %c0_65 = arith.constant 0 : index
    %201 = vector.load %arg5[%c0_64, %c0_65] : memref<32x16xf32, #tpu.memory_space<vmem>>, vector<32x16xf32>
    %c0_66 = arith.constant 0 : index
    %c0_67 = arith.constant 0 : index
    %202 = vector.load %arg6[%c0_66, %c0_67] : memref<1x16xf32, #tpu.memory_space<vmem>>, vector<1x16xf32>
    %203 = vector.extract_strided_slice %74 {offsets = [0, 0], sizes = [1, 32], strides = [1, 1]} : vector<2x32xf32> to vector<1x32xf32>
    %204 = vector.extract_strided_slice %92 {offsets = [0, 0], sizes = [1, 32], strides = [1, 1]} : vector<2x32xf32> to vector<1x32xf32>
    %205 = vector.extract_strided_slice %110 {offsets = [0, 0], sizes = [1, 32], strides = [1, 1]} : vector<2x32xf32> to vector<1x32xf32>
    %206 = vector.extract_strided_slice %128 {offsets = [0, 0], sizes = [1, 32], strides = [1, 1]} : vector<2x32xf32> to vector<1x32xf32>
    %207 = vector.extract_strided_slice %146 {offsets = [0, 0], sizes = [1, 32], strides = [1, 1]} : vector<2x32xf32> to vector<1x32xf32>
    %208 = vector.extract_strided_slice %164 {offsets = [0, 0], sizes = [1, 32], strides = [1, 1]} : vector<2x32xf32> to vector<1x32xf32>
    %209 = vector.extract_strided_slice %182 {offsets = [0, 0], sizes = [1, 32], strides = [1, 1]} : vector<2x32xf32> to vector<1x32xf32>
    %210 = vector.extract_strided_slice %200 {offsets = [0, 0], sizes = [1, 32], strides = [1, 1]} : vector<2x32xf32> to vector<1x32xf32>
    %211 = tpu.concatenate %203, %204, %205, %206, %207, %208, %209, %210 in 0 : vector<1x32xf32>, vector<1x32xf32>, vector<1x32xf32>, vector<1x32xf32>, vector<1x32xf32>, vector<1x32xf32>, vector<1x32xf32>, vector<1x32xf32> -> vector<8x32xf32>
    %cst_68 = arith.constant dense<0.000000e+00> : vector<8x16xf32>
    %212 = tpu.matmul %211, %201, %cst_68 {dimension_numbers = #tpu.dot_dimension_numbers<[1], [0], [0], [1], [0, 0, 1, 1], [], []>} : vector<8x32xf32>, vector<32x16xf32>, vector<8x16xf32> -> vector<8x16xf32>
    %213 = vector.broadcast %202 : vector<1x16xf32> to vector<8x16xf32>
    %214 = arith.addf %212, %213 : vector<8x16xf32>
    %c0_69 = arith.constant 0 : index
    %c0_70 = arith.constant 0 : index
    %c0_71 = arith.constant 0 : index
    %215 = vector.load %arg7[%c0_69, %c0_70, %c0_71] : memref<2x8x16xf32, #tpu.memory_space<vmem>>, vector<1x8x16xf32>
    %216 = vector.shape_cast %215 : vector<1x8x16xf32> to vector<8x16xf32>
    %217 = vector.shape_cast %214 : vector<8x16xf32> to vector<1x8x16xf32>
    tpu.vector_store %arg7[%c0_69, %c0_70, %c0_71], %217 {strides = array<i32>} : memref<2x8x16xf32, #tpu.memory_space<vmem>>, vector<1x8x16xf32>,
    %218 = vector.extract_strided_slice %74 {offsets = [1, 0], sizes = [1, 32], strides = [1, 1]} : vector<2x32xf32> to vector<1x32xf32>
    %219 = vector.extract_strided_slice %92 {offsets = [1, 0], sizes = [1, 32], strides = [1, 1]} : vector<2x32xf32> to vector<1x32xf32>
    %220 = vector.extract_strided_slice %110 {offsets = [1, 0], sizes = [1, 32], strides = [1, 1]} : vector<2x32xf32> to vector<1x32xf32>
    %221 = vector.extract_strided_slice %128 {offsets = [1, 0], sizes = [1, 32], strides = [1, 1]} : vector<2x32xf32> to vector<1x32xf32>
    %222 = vector.extract_strided_slice %146 {offsets = [1, 0], sizes = [1, 32], strides = [1, 1]} : vector<2x32xf32> to vector<1x32xf32>
    %223 = vector.extract_strided_slice %164 {offsets = [1, 0], sizes = [1, 32], strides = [1, 1]} : vector<2x32xf32> to vector<1x32xf32>
    %224 = vector.extract_strided_slice %182 {offsets = [1, 0], sizes = [1, 32], strides = [1, 1]} : vector<2x32xf32> to vector<1x32xf32>
    %225 = vector.extract_strided_slice %200 {offsets = [1, 0], sizes = [1, 32], strides = [1, 1]} : vector<2x32xf32> to vector<1x32xf32>
    %226 = tpu.concatenate %218, %219, %220, %221, %222, %223, %224, %225 in 0 : vector<1x32xf32>, vector<1x32xf32>, vector<1x32xf32>, vector<1x32xf32>, vector<1x32xf32>, vector<1x32xf32>, vector<1x32xf32>, vector<1x32xf32> -> vector<8x32xf32>
    %cst_72 = arith.constant dense<0.000000e+00> : vector<8x16xf32>
    %227 = tpu.matmul %226, %201, %cst_72 {dimension_numbers = #tpu.dot_dimension_numbers<[1], [0], [0], [1], [0, 0, 1, 1], [], []>} : vector<8x32xf32>, vector<32x16xf32>, vector<8x16xf32> -> vector<8x16xf32>
    %228 = vector.broadcast %202 : vector<1x16xf32> to vector<8x16xf32>
    %229 = arith.addf %227, %228 : vector<8x16xf32>
    %c1_73 = arith.constant 1 : index
    %c0_74 = arith.constant 0 : index
    %c0_75 = arith.constant 0 : index
    %230 = vector.load %arg7[%c1_73, %c0_74, %c0_75] : memref<2x8x16xf32, #tpu.memory_space<vmem>>, vector<1x8x16xf32>
    %231 = vector.shape_cast %230 : vector<1x8x16xf32> to vector<8x16xf32>
    %232 = vector.shape_cast %229 : vector<8x16xf32> to vector<1x8x16xf32>
    tpu.vector_store %arg7[%c1_73, %c0_74, %c0_75], %232 {strides = array<i32>} : memref<2x8x16xf32, #tpu.memory_space<vmem>>, vector<1x8x16xf32>,
    return
  }
}

</mosaic_0001>

<bundles_post_ra>
// kernel: lstm_model_forward.1
= control target key start
LH: loop header
LB: loop body
LE: loop exit
PB: predicated region body
PF: predicated region fallthrough
CT: control target
= control target key end

     0   :  { %12 = vsyncpa [#allocation4], 0  ;;  %s2027_s0 = inlined_call_operand.vmem [shape: s32[2,8], index: 0, kind: input, shape index: {}]   ;;  %s2028_s1 = inlined_call_operand.vmem [shape: f32[50,32], index: 1, kind: input, shape index: {}]   ;;  %s2029_s2 = inlined_call_operand.vmem [shape: f32[32,128], index: 2, kind: input, shape index: {}]   ;;  %s2030_s3 = inlined_call_operand.vmem [shape: f32[32,128], index: 3, kind: input, shape index: {}]   ;;  %s2031_s4 = inlined_call_operand.vmem [shape: f32[1,128], index: 4, kind: input, shape index: {}]   ;;  %s2032_s5 = inlined_call_operand.vmem [shape: f32[32,16], index: 5, kind: input, shape index: {}]   ;;  %s2033_s6 = inlined_call_operand.vmem [shape: f32[1,16], index: 6, kind: input, shape index: {}]   ;;  %s2034_s7 = inlined_call_operand.hbm [shape: f32[2,8,16], index: 7, kind: output, shape index: {}]  }
   0x1   :  { %13 = vsyncpa [#allocation3], 0  ;;  %s20_s26 = sshll.u32 %s2027_s0, 4  ;;  %s21_s26 = int_to_ptr.vmem [resolvable:$true] %s20_s26 }
   0x2   :  { %s1615_s27 = scalar_lea.vmem %s21_s26, 32  ;;  %p1620_p1 = scmp.lt.s32.totalorder %s21_s26, %s21_s26 }
   0x3   :  { %p1616_p0 = scmp.ne.s32.totalorder %s21_s26, %s1615_s27  ;;  %p1621_p2 = scmp.lt.s32.totalorder %s1615_s27, %s1615_s27 }
   0x5   :  { %p1622_p3 = por %p1621_p2, %p1620_p1 }
   0x7   :  { %p1623_p4 = pnand %p1622_p3, %p1616_p0 }
   0x9   :  { %1626 = shalt.err (!%p1623_p4)
}
   0xa   :  { %s1651_s28 = smov [#allocation2]  }
   0xb   :  { %23 = dma.vmem_to_smem %s21_s26, 32, %s1651_s28, [#allocation4]  }
   0xc   :  { %1647 = dma.done.wait [#allocation4], 32  }
   0xd   :  { %1648 = vsyncadd [#allocation4], 4294967264 }
   0xe   :  { %39 = sfence }
   0xf   :  { %v154_v0 = vld [vmem:[%s2029_s2 + $0x18] sm:$0xff]  ;;  %v153_v1 = vld [vmem:[%s2029_s2 + $0x10] sm:$0xff]  ;;  %s1713_s11 = sld [smem:[#allocation2]]  ;;  %v1652_v3 = vmov 0.0   ;;  %v152_v5 = vld [vmem:[%s2029_s2 + $0x8] sm:$0xff]  ;;  %vm130_vm0 = vcmask 1040384  }
  0x10   :  { %v1711_v2 = vld [vmem:[%s2030_s3 + $0x18] sm:$0xff]  ;;  %1422 = vmatprep.subr.mxu0 %v154_v0  ;;  %1433 = vmatprep.subr.mxu1 %v1652_v3  ;;  %v1719_v4 = vld [vmem:[%s2030_s3 + $0x10] sm:$0xff]  ;;  %s1330_s14 = sld [smem:[#allocation2 + $0x80]]  ;;  %v1731_v6 = vld [vmem:[%s2030_s3 + $0x8] sm:$0xff]  ;;  %vm132_vm1 = vcmask 1041408   ;;  %vm1653_vm2 = vmmov 0  }
  0x11   :  { %1423 = vmatpush3.msra.mxu0 %v154_v0  ;;  %1434 = vmatpush3.msra.mxu1 %v1711_v2  ;;  %s1331_s17 = sld [smem:[#allocation2 + $0x1]]  ;;  %v151_v7 = vld [vmem:[%s2029_s2] sm:$0xff]  ;;  %vm134_vm3 = vcmask 1042432   ;;  %vm136_vm4 = vcmask 1043456   ;;  %vm138_vm5 = vcmask 1044480   ;;  %vm140_vm6 = vcmask 1045504  }
  0x12   :  { %1424 = vmatprep.subr.mxu0 %v153_v1  ;;  %1435 = vmatprep.subr.mxu1 %v1652_v3  ;;  %s1726_s18 = sld [smem:[#allocation2 + $0x81]]  ;;  %v1745_v8 = vld [vmem:[%s2030_s3] sm:$0xff]  ;;  %vm142_vm7 = vcmask 1046528   ;;  %vm162_vm8 = vcmask 261120   ;;  %s1654_s3 = smov 64   ;;  %vm1198_vm9 = vcmask 130048  }
  0x13   :  { %1425 = vmatpush3.msra.mxu0 %v153_v1  ;;  %1436 = vmatpush3.msra.mxu1 %v1719_v4  ;;  %s1737_s23 = sld [smem:[#allocation2 + $0x2]]  ;;  %v1345_v55 = vld [vmem:[%s2031_s4] ss:$0 sm:$0xff]  ;;  %s1655_s4 = smov 32  }
  0x14   :  { %1426 = vmatprep.subr.mxu0 %v152_v5  ;;  %1437 = vmatprep.subr.mxu1 %v1652_v3  ;;  %s1740_s24 = sld [smem:[#allocation2 + $0x82]] }
  0x15   :  { %1427 = vmatpush3.msra.mxu0 %v152_v5  ;;  %s41_s29 = scalar_lea.vmem %s2028_s1, %s1713_s11  ;;  %s1751_s30 = sld [smem:[#allocation2 + $0x3]]  ;;  %1438 = vmatpush3.msra.mxu1 %v1731_v6 }
  0x16   :  { %1428 = vmatprep.subr.mxu0 %v151_v7  ;;  %s44_s9 = scalar_lea.vmem %s2028_s1, %s1330_s14  ;;  %s1757_s0 = sld [smem:[#allocation2 + $0x83]]  ;;  %1439 = vmatprep.subr.mxu1 %v1652_v3  ;;  %v42_v9 = vld [vmem:[%s41_s29] sm:$0x1] }
  0x17   :  { %1429 = vmatpush3.msra.mxu0 %v151_v7  ;;  %v45_v10 = vld [vmem:[%s44_s9] sm:$0x1]  ;;  %s47_s11 = scalar_lea.vmem %s2028_s1, %s1331_s17  ;;  %s1763_s12 = sld [smem:[#allocation2 + $0x4]]  ;;  %1440 = vmatpush3.msra.mxu1 %v1745_v8 }
  0x18   :  { %v48_v11 = vld [vmem:[%s47_s11] sm:$0x1]  ;;  %s50_s15 = scalar_lea.vmem %s2028_s1, %s1726_s18  ;;  %v89_v12 = vrot.slane %v45_v10, 7  ;;  %s1770_s16 = sld [smem:[#allocation2 + $0x84]]  ;;  %1441 = vmatprep.mubr.msk.f32.mxu1 %vm1653_vm2, %v1652_v3  ;;  %1444 = vmatprep.subr.mxu0 %v1652_v3 }
  0x19   :  { %v51_v13 = vld [vmem:[%s50_s15] sm:$0x1]  ;;  %s53_s20 = scalar_lea.vmem %s2028_s1, %s1737_s23  ;;  %v92_v14 = vrot.slane %v48_v11, 6  ;;  %s1779_s21 = sld [smem:[#allocation2 + $0x5]]  ;;  %1442 = vmatmul.mubr.f32.vlgmr.msra.gmra.mxu1 %v1652_v3  ;;  %1455 = vmatprep.subr.mxu1 %v1652_v3 }
  0x1a   :  { %v54_v15 = vld [vmem:[%s53_s20] sm:$0x1]  ;;  %s56_s25 = scalar_lea.vmem %s2028_s1, %s1740_s24  ;;  %v95_v16 = vrot.slane %v51_v13, 5  ;;  %v131_v17 = vsel %vm130_vm0, %v42_v9, %v89_v12  ;;  %s1788_s26 = sld [smem:[#allocation2 + $0x85]]  ;;  %1456 = vmatpush3.msra.mxu1 %v1711_v2  ;;  %1463 = vmatprep.mubr.msk.f32.mxu1 %vm1653_vm2, %v1652_v3 }
  0x1b   :  { %v57_v18 = vld [vmem:[%s56_s25] sm:$0x1]  ;;  %s59_s28 = scalar_lea.vmem %s2028_s1, %s1751_s30  ;;  %v98_v19 = vrot.slane %v54_v15, 4  ;;  %v133_v20 = vsel %vm132_vm1, %v131_v17, %v92_v14  ;;  %s1798_s24 = sld [smem:[#allocation2 + $0x6]]  ;;  %1457 = vmatprep.subr.mxu1 %v1652_v3 }
  0x1c   :  { %v60_v21 = vld [vmem:[%s59_s28] sm:$0x1]  ;;  %s62_s8 = scalar_lea.vmem %s2028_s1, %s1757_s0  ;;  %v101_v22 = vrot.slane %v57_v18, 3  ;;  %v135_v23 = vsel %vm134_vm3, %v133_v20, %v95_v16  ;;  %s1806_s30 = sld [smem:[#allocation2 + $0x86]]  ;;  %1458 = vmatpush3.msra.mxu1 %v1719_v4 }
  0x1d   :  { %v63_v24 = vld [vmem:[%s62_s8] sm:$0x1]  ;;  %v104_v25 = vrot.slane %v60_v21, 2  ;;  %v137_v26 = vsel %vm136_vm4, %v135_v23, %v98_v19  ;;  %s65_s10 = scalar_lea.vmem %s2028_s1, %s1763_s12  ;;  %s1814_s0 = sld [smem:[#allocation2 + $0x7]]  ;;  %1459 = vmatprep.subr.mxu1 %v1652_v3 }
  0x1e   :  { %v107_v27 = vrot.slane %v63_v24, 1  ;;  %v139_v28 = vsel %vm138_vm5, %v137_v26, %v101_v22  ;;  %s68_s14 = scalar_lea.vmem %s2028_s1, %s1770_s16  ;;  %s1822_s15 = sld [smem:[#allocation2 + $0x87]]  ;;  %1460 = vmatpush3.msra.mxu1 %v1731_v6  ;;  %v66_v30 = vld [vmem:[%s65_s10] sm:$0x1] }
  0x1f   :  { %v141_v29 = vsel %vm140_vm6, %v139_v28, %v104_v25  ;;  %v69_v31 = vld [vmem:[%s68_s14] sm:$0x1]  ;;  %s71_s19 = scalar_lea.vmem %s2028_s1, %s1779_s21  ;;  %1461 = vmatprep.subr.mxu1 %v1652_v3  ;;  %s1656_s16 = smov [#allocation5]  }
  0x20   :  { %v143_v32 = vsel %vm142_vm7, %v141_v29, %v107_v27  ;;  %v72_v33 = vld [vmem:[%s71_s19] sm:$0x1]  ;;  %s74_s18 = scalar_lea.vmem %s2028_s1, %s1788_s26  ;;  %v110_v34 = vrot.slane %v69_v31, 7  ;;  %1462 = vmatpush3.msra.mxu1 %v1745_v8  ;;  %s1302_s20 = sshll.u32 %s1656_s16, 4  ;;  %s1303_s20 = int_to_ptr.vmem [resolvable:$true] %s1302_s20 }
  0x21   :  { %1430 = vmatprep.mubr.msk.f32.mxu0 %vm162_vm8, %v143_v32  ;;  %v75_v35 = vld [vmem:[%s74_s18] sm:$0x1]  ;;  %s77_s21 = scalar_lea.vmem %s2028_s1, %s1798_s24  ;;  %v113_v36 = vrot.slane %v72_v33, 6  ;;  %1477 = vmatprep.subr.mxu1 %v1652_v3  ;;  %s1627_s18 = scalar_lea.vmem %s1303_s20, 256 }
  0x22   :  { %v78_v37 = vld [vmem:[%s77_s21] sm:$0x1]  ;;  %s80_s28 = scalar_lea.vmem %s2028_s1, %s1806_s30  ;;  %v116_v38 = vrot.slane %v75_v35, 5  ;;  %v144_v39 = vsel %vm130_vm0, %v66_v30, %v110_v34  ;;  %p1628_p5 = scmp.ne.s32.totalorder %s1303_s20, %s1627_s18 }
  0x23   :  { %v81_v40 = vld [vmem:[%s80_s28] sm:$0x1]  ;;  %s83_s2 = scalar_lea.vmem %s2028_s1, %s1814_s0  ;;  %v119_v41 = vrot.slane %v78_v37, 4  ;;  %v145_v42 = vsel %vm132_vm1, %v144_v39, %v113_v36  ;;  %p1632_p6 = scmp.lt.s32.totalorder %s1303_s20, %s1303_s20 }
  0x24   :  { %v84_v43 = vld [vmem:[%s83_s2] sm:$0x1]  ;;  %s86_s9 = scalar_lea.vmem %s2028_s1, %s1822_s15  ;;  %v122_v44 = vrot.slane %v81_v40, 3  ;;  %v146_v45 = vsel %vm134_vm3, %v145_v42, %v116_v38  ;;  %p1633_p7 = scmp.lt.s32.totalorder %s1627_s18, %s1627_s18 }
  0x25   :  { %v87_v46 = vld [vmem:[%s86_s9] sm:$0x1]  ;;  %v125_v47 = vrot.slane %v84_v43, 2  ;;  %v147_v48 = vsel %vm136_vm4, %v146_v45, %v119_v41 }
  0x26   :  { %v128_v49 = vrot.slane %v87_v46, 1  ;;  %v148_v50 = vsel %vm138_vm5, %v147_v48, %v122_v44  ;;  %p1634_p8 = por %p1633_p7, %p1632_p6 }
  0x27   :  { %v149_v51 = vsel %vm140_vm6, %v148_v50, %v125_v47 }
  0x28   :  { %v150_v52 = vsel %vm142_vm7, %v149_v51, %v128_v49  ;;  %p1635_p9 = pnand %p1634_p8, %p1628_p5 }
  0x29   :  { %1431 = vmatmul.mubr.msk.f32.vlgmr.msra.gmra.mxu0 %vm162_vm8, %v150_v52 }
  0x2a   :  { %1445 = vmatpush3.msra.mxu0 %v1711_v2  ;;  %1452 = vmatprep.mubr.msk.f32.mxu0 %vm1653_vm2, %v1652_v3 }
  0x2b   :  { %1446 = vmatprep.subr.mxu0 %v1652_v3 }
  0x2c   :  { %1447 = vmatpush3.msra.mxu0 %v1719_v4 }
  0x2d   :  { %1448 = vmatprep.subr.mxu0 %v1652_v3 }
  0x2e   :  { %1449 = vmatpush3.msra.mxu0 %v1731_v6 }
  0x2f   :  { %1450 = vmatprep.subr.mxu0 %v1652_v3 }
  0x30   :  { %1451 = vmatpush3.msra.mxu0 %v1745_v8 }
  0x31   :  { %1466 = vmatprep.subr.mxu0 %v1652_v3 }
  0xd9   :  { %v317_v53 = vpop.f32.mrf.mxu1 }
  0xdb   :  { %v1443_v54 = vpop.f32.mrf.mxu1 }
  0xe9   :  { %v1432_v56 = vpop.f32.mrf.mxu0 }
  0xea   :  { %v1876_v57 = vadd.f32 %v1432_v56, %v1345_v55 }
  0xeb   :  { %v235_v58 = vpop.f32.mrf.mxu0 }
  0xec   :  { %v1878_v59 = vadd.f32 %v1345_v55, %v235_v58 }
  0xee   :  { %v321_v60 = vadd.f32 %v317_v53, %v1878_v59 }
  0xf0   :  { %1551 = vtanh.f32 %v321_v60  ;;  %v1348_v62 = vmul.f32 -1.442695, %v321_v60 }
  0xf2   :  { %1553 = vpow2.f32 %v1348_v62 }
  0xfd   :  { %v1552_v61 = vpop.eup %1551 }
  0xfe   :  { %331 = vrot.lane.b32.xlu0 %v1552_v61, %s1654_s3 }
  0xff   :  { %v1554_v63 = vpop.eup %1553 }
 0x100   :  { %v325_v0 = vadd.f32 1.0, %v1554_v63 }
 0x102   :  { %1555 = vrcp.f32 %v325_v0 }
 0x10f   :  { %v1556_v1 = vpop.eup %1555 }
 0x110   :  { %v329_v9 = vmul.f32 0.0, %v1556_v1 }
 0x170   :  { %v332_v5 = vpop.permute.xlu0 %331 }
 0x171   :  { %v334_v7 = vmul.f32 %v1556_v1, %v332_v5 }
 0x173   :  { %336 = vrot.lane.b32.xlu0 %v334_v7, %s1655_s4 }
 0x1e5   :  { %v337_v10 = vpop.permute.xlu0 %336 }
 0x1e6   :  { %v339_v11 = vadd.f32 %v337_v10, %v329_v9 }
 0x1e8   :  { %1557 = vtanh.f32 %v339_v11  ;;  %v433_v27 = vrot.slane %v339_v11, 6 }
 0x1f5   :  { %v1558_v12 = vpop.eup %1557 }
 0x1f6   :  { %342 = vrot.lane.b32.xlu1 %v1558_v12, %s1654_s3 }
 0x268   :  { %v343_v13 = vpop.permute.xlu1 %342 }
 0x269   :  { %v1884_v14 = vmul.f32 %v1556_v1, %v343_v13 }
 0x26b   :  { %347 = vrot.lane.b32.xlu1 %v1884_v14, %s1655_s4  ;;  %v1200_v55 = vrot.slane %v1884_v14, 1 }
 0x2dd   :  { %v348_v15 = vpop.permute.xlu1 %347 }
 0x2de   :  { %1453 = vmatmul.mubr.msk.f32.vlgmr.msra.gmra.mxu0 %vm162_vm8, %v348_v15 }
 0x2df   :  { %1467 = vmatpush3.msra.mxu0 %v1711_v2  ;;  %1474 = vmatprep.mubr.msk.f32.mxu0 %vm1653_vm2, %v1652_v3 }
 0x2e0   :  { %1468 = vmatprep.subr.mxu0 %v1652_v3 }
 0x2e1   :  { %1469 = vmatpush3.msra.mxu0 %v1719_v4 }
 0x2e2   :  { %1470 = vmatprep.subr.mxu0 %v1652_v3 }
 0x2e3   :  { %1471 = vmatpush3.msra.mxu0 %v1731_v6 }
 0x2e4   :  { %1472 = vmatprep.subr.mxu0 %v1652_v3 }
 0x2e5   :  { %1473 = vmatpush3.msra.mxu0 %v1745_v8 }
 0x2e6   :  { %1488 = vmatprep.subr.mxu0 %v1652_v3 }
 0x39e   :  { %v417_v16 = vpop.f32.mrf.mxu0 }
 0x39f   :  { %v422_v17 = vrot.slane %v417_v16, 6 }
 0x3a0   :  { %v1454_v18 = vpop.f32.mrf.mxu0 }
 0x3a1   :  { %v424_v19 = vadd.f32 %v422_v17, %v1878_v59 }
 0x3a3   :  { %1559 = vtanh.f32 %v424_v19  ;;  %v1350_v21 = vmul.f32 -1.442695, %v424_v19 }
 0x3a5   :  { %1561 = vpow2.f32 %v1350_v21 }
 0x3b0   :  { %v1560_v20 = vpop.eup %1559 }
 0x3b1   :  { %437 = vrot.lane.b32.xlu0 %v1560_v20, %s1654_s3 }
 0x3b2   :  { %v1562_v22 = vpop.eup %1561 }
 0x3b3   :  { %v428_v23 = vadd.f32 1.0, %v1562_v22 }
 0x3b5   :  { %1563 = vrcp.f32 %v428_v23 }
 0x3c2   :  { %v1564_v24 = vpop.eup %1563 }
 0x3c3   :  { %v435_v28 = vmul.f32 %v1564_v24, %v433_v27 }
 0x423   :  { %v438_v25 = vpop.permute.xlu0 %437 }
 0x424   :  { %v440_v26 = vmul.f32 %v1564_v24, %v438_v25 }
 0x426   :  { %442 = vrot.lane.b32.xlu1 %v440_v26, %s1655_s4 }
 0x498   :  { %v443_v29 = vpop.permute.xlu1 %442 }
 0x499   :  { %v445_v30 = vadd.f32 %v443_v29, %v435_v28 }
 0x49b   :  { %1565 = vtanh.f32 %v445_v30  ;;  %v540_v47 = vrot.slane %v445_v30, 6 }
 0x4a8   :  { %v1566_v31 = vpop.eup %1565 }
 0x4a9   :  { %448 = vrot.lane.b32.xlu0 %v1566_v31, %s1654_s3 }
 0x51b   :  { %v449_v32 = vpop.permute.xlu0 %448 }
 0x51c   :  { %v451_v33 = vmul.f32 %v1564_v24, %v449_v32 }
 0x51e   :  { %v453_v34 = vrot.slane %v451_v33, 2  ;;  %v1095_v52 = vrot.slane %v451_v33, 1 }
 0x520   :  { %454 = vrot.lane.b32.xlu1 %v453_v34, %s1655_s4  ;;  %v1110_v61 = vsel %vm130_vm0, %v1884_v14, %v1095_v52  ;;  %v1213_v62 = vsel %vm130_vm0, %v1200_v55, %v453_v34 }
 0x592   :  { %v455_v35 = vpop.permute.xlu1 %454 }
 0x593   :  { %1464 = vmatmul.mubr.msk.f32.vlgmr.msra.gmra.mxu1 %vm162_vm8, %v455_v35 }
 0x594   :  { %1478 = vmatpush3.msra.mxu1 %v1711_v2  ;;  %1485 = vmatprep.mubr.msk.f32.mxu1 %vm1653_vm2, %v1652_v3 }
 0x595   :  { %1479 = vmatprep.subr.mxu1 %v1652_v3 }
 0x596   :  { %1480 = vmatpush3.msra.mxu1 %v1719_v4 }
 0x597   :  { %1481 = vmatprep.subr.mxu1 %v1652_v3 }
 0x598   :  { %1482 = vmatpush3.msra.mxu1 %v1731_v6 }
 0x599   :  { %1483 = vmatprep.subr.mxu1 %v1652_v3 }
 0x59a   :  { %1484 = vmatpush3.msra.mxu1 %v1745_v8 }
 0x59b   :  { %1499 = vmatprep.subr.mxu1 %v1652_v3 }
 0x653   :  { %v524_v36 = vpop.f32.mrf.mxu1 }
 0x654   :  { %v529_v37 = vrot.slane %v524_v36, 4 }
 0x655   :  { %v1465_v38 = vpop.f32.mrf.mxu1 }
 0x656   :  { %v531_v39 = vadd.f32 %v529_v37, %v1878_v59 }
 0x658   :  { %1567 = vtanh.f32 %v531_v39  ;;  %v1352_v41 = vmul.f32 -1.442695, %v531_v39 }
 0x65a   :  { %1569 = vpow2.f32 %v1352_v41 }
 0x665   :  { %v1568_v40 = vpop.eup %1567 }
 0x666   :  { %544 = vrot.lane.b32.xlu0 %v1568_v40, %s1654_s3 }
 0x667   :  { %v1570_v42 = vpop.eup %1569 }
 0x668   :  { %v535_v43 = vadd.f32 1.0, %v1570_v42 }
 0x66a   :  { %1571 = vrcp.f32 %v535_v43 }
 0x677   :  { %v1572_v44 = vpop.eup %1571 }
 0x678   :  { %v542_v48 = vmul.f32 %v1572_v44, %v540_v47 }
 0x6d8   :  { %v545_v45 = vpop.permute.xlu0 %544 }
 0x6d9   :  { %v547_v46 = vmul.f32 %v1572_v44, %v545_v45 }
 0x6db   :  { %549 = vrot.lane.b32.xlu1 %v547_v46, %s1655_s4 }
 0x74d   :  { %v550_v49 = vpop.permute.xlu1 %549 }
 0x74e   :  { %v552_v50 = vadd.f32 %v550_v49, %v542_v48 }
 0x750   :  { %1573 = vtanh.f32 %v552_v50  ;;  %v647_v18 = vrot.slane %v552_v50, 6 }
 0x75d   :  { %v1574_v51 = vpop.eup %1573 }
 0x75e   :  { %555 = vrot.lane.b32.xlu0 %v1574_v51, %s1654_s3 }
 0x7d0   :  { %v556_v53 = vpop.permute.xlu0 %555 }
 0x7d1   :  { %v558_v54 = vmul.f32 %v1572_v44, %v556_v53 }
 0x7d3   :  { %v1097_v56 = vrot.slane %v558_v54, 2  ;;  %v1203_v58 = vrot.slane %v558_v54, 3  ;;  %v560_v60 = vrot.slane %v558_v54, 4 }
 0x7d5   :  { %v1111_v63 = vsel %vm132_vm1, %v1110_v61, %v1097_v56  ;;  %v1214_v0 = vsel %vm132_vm1, %v1213_v62, %v1203_v58  ;;  %561 = vrot.lane.b32.xlu1 %v560_v60, %s1655_s4 }
 0x847   :  { %v562_v1 = vpop.permute.xlu1 %561 }
 0x848   :  { %1475 = vmatmul.mubr.msk.f32.vlgmr.msra.gmra.mxu0 %vm162_vm8, %v562_v1 }
 0x849   :  { %1489 = vmatpush3.msra.mxu0 %v1711_v2  ;;  %1496 = vmatprep.mubr.msk.f32.mxu0 %vm1653_vm2, %v1652_v3 }
 0x84a   :  { %1490 = vmatprep.subr.mxu0 %v1652_v3 }
 0x84b   :  { %1491 = vmatpush3.msra.mxu0 %v1719_v4 }
 0x84c   :  { %1492 = vmatprep.subr.mxu0 %v1652_v3 }
 0x84d   :  { %1493 = vmatpush3.msra.mxu0 %v1731_v6 }
 0x84e   :  { %1494 = vmatprep.subr.mxu0 %v1652_v3 }
 0x84f   :  { %1495 = vmatpush3.msra.mxu0 %v1745_v8 }
 0x850   :  { %1510 = vmatprep.subr.mxu0 %v1652_v3 }
 0x908   :  { %v631_v5 = vpop.f32.mrf.mxu0 }
 0x909   :  { %v636_v7 = vrot.slane %v631_v5, 2 }
 0x90a   :  { %v1476_v9 = vpop.f32.mrf.mxu0 }
 0x90b   :  { %v638_v10 = vadd.f32 %v636_v7, %v1878_v59 }
 0x90d   :  { %1575 = vtanh.f32 %v638_v10  ;;  %v1354_v12 = vmul.f32 -1.442695, %v638_v10 }
 0x90f   :  { %1577 = vpow2.f32 %v1354_v12 }
 0x91a   :  { %v1576_v11 = vpop.eup %1575 }
 0x91b   :  { %651 = vrot.lane.b32.xlu0 %v1576_v11, %s1654_s3 }
 0x91c   :  { %v1578_v13 = vpop.eup %1577 }
 0x91d   :  { %v642_v14 = vadd.f32 1.0, %v1578_v13 }
 0x91f   :  { %1579 = vrcp.f32 %v642_v14 }
 0x92c   :  { %v1580_v15 = vpop.eup %1579 }
 0x92d   :  { %v649_v19 = vmul.f32 %v1580_v15, %v647_v18 }
 0x98d   :  { %v652_v16 = vpop.permute.xlu0 %651 }
 0x98e   :  { %v654_v17 = vmul.f32 %v1580_v15, %v652_v16 }
 0x990   :  { %656 = vrot.lane.b32.xlu1 %v654_v17, %s1655_s4 }
 0xa02   :  { %v657_v20 = vpop.permute.xlu1 %656 }
 0xa03   :  { %v659_v21 = vadd.f32 %v657_v20, %v649_v19 }
 0xa05   :  { %1581 = vtanh.f32 %v659_v21  ;;  %v751_v40 = vrot.slane %v659_v21, 6 }
 0xa12   :  { %v1582_v59 = vpop.eup %1581 }
 0xa13   :  { %662 = vrot.lane.b32.xlu0 %v1582_v59, %s1654_s3 }
 0xa85   :  { %v663_v22 = vpop.permute.xlu0 %662 }
 0xa86   :  { %v665_v23 = vmul.f32 %v1580_v15, %v663_v22 }
 0xa88   :  { %v1099_v24 = vrot.slane %v665_v23, 3  ;;  %v1205_v25 = vrot.slane %v665_v23, 4  ;;  %v667_v26 = vrot.slane %v665_v23, 6 }
 0xa8a   :  { %v1112_v27 = vsel %vm134_vm3, %v1111_v63, %v1099_v24  ;;  %v1215_v28 = vsel %vm134_vm3, %v1214_v0, %v1205_v25  ;;  %668 = vrot.lane.b32.xlu1 %v667_v26, %s1655_s4 }
 0xafc   :  { %v669_v29 = vpop.permute.xlu1 %668 }
 0xafd   :  { %1486 = vmatmul.mubr.msk.f32.vlgmr.msra.gmra.mxu1 %vm162_vm8, %v669_v29 }
 0xafe   :  { %1500 = vmatpush3.msra.mxu1 %v1711_v2  ;;  %1507 = vmatprep.mubr.msk.f32.mxu1 %vm1653_vm2, %v1652_v3 }
 0xaff   :  { %1501 = vmatprep.subr.mxu1 %v1652_v3 }
 0xb00   :  { %1502 = vmatpush3.msra.mxu1 %v1719_v4 }
 0xb01   :  { %1503 = vmatprep.subr.mxu1 %v1652_v3 }
 0xb02   :  { %1504 = vmatpush3.msra.mxu1 %v1731_v6 }
 0xb03   :  { %1505 = vmatprep.subr.mxu1 %v1652_v3 }
 0xb04   :  { %1506 = vmatpush3.msra.mxu1 %v1745_v8 }
 0xb05   :  { %1521 = vmatprep.subr.mxu1 %v1652_v3 }
 0xbbd   :  { %v738_v30 = vpop.f32.mrf.mxu1 }
 0xbbe   :  { %v742_v31 = vadd.f32 %v738_v30, %v1876_v57 }
 0xbbf   :  { %v1487_v32 = vpop.f32.mrf.mxu1 }
 0xbc0   :  { %1583 = vtanh.f32 %v742_v31  ;;  %v1356_v34 = vmul.f32 -1.442695, %v742_v31 }
 0xbc2   :  { %1585 = vpow2.f32 %v1356_v34 }
 0xbcd   :  { %v1584_v33 = vpop.eup %1583 }
 0xbce   :  { %755 = vrot.lane.b32.xlu0 %v1584_v33, %s1654_s3 }
 0xbcf   :  { %v1586_v35 = vpop.eup %1585 }
 0xbd0   :  { %v746_v36 = vadd.f32 1.0, %v1586_v35 }
 0xbd2   :  { %1587 = vrcp.f32 %v746_v36 }
 0xbdf   :  { %v1588_v37 = vpop.eup %1587 }
 0xbe0   :  { %v753_v41 = vmul.f32 %v1588_v37, %v751_v40 }
 0xc40   :  { %v756_v38 = vpop.permute.xlu0 %755 }
 0xc41   :  { %v758_v39 = vmul.f32 %v1588_v37, %v756_v38 }
 0xc43   :  { %760 = vrot.lane.b32.xlu1 %v758_v39, %s1655_s4 }
 0xcb5   :  { %v761_v42 = vpop.permute.xlu1 %760 }
 0xcb6   :  { %v763_v43 = vadd.f32 %v761_v42, %v753_v41 }
 0xcb8   :  { %1589 = vtanh.f32 %v763_v43 }
 0xcc5   :  { %v1590_v44 = vpop.eup %1589 }
 0xcc6   :  { %766 = vrot.lane.b32.xlu0 %v1590_v44, %s1654_s3 }
 0xd38   :  { %v767_v45 = vpop.permute.xlu0 %766 }
 0xd39   :  { %v769_v46 = vmul.f32 %v1588_v37, %v767_v45 }
 0xd3b   :  { %v1101_v47 = vrot.slane %v769_v46, 4  ;;  %v1207_v48 = vrot.slane %v769_v46, 5  ;;  %771 = vrot.lane.b32.xlu1 %v769_v46, %s1655_s4 }
 0xd3d   :  { %v1216_v49 = vsel %vm136_vm4, %v1215_v28, %v1207_v48  ;;  %v1113_v50 = vsel %vm136_vm4, %v1112_v27, %v1101_v47 }
 0xdad   :  { %v772_v51 = vpop.permute.xlu1 %771 }
 0xdae   :  { %1497 = vmatmul.mubr.msk.f32.vlgmr.msra.gmra.mxu0 %vm162_vm8, %v772_v51 }
 0xdaf   :  { %1511 = vmatpush3.msra.mxu0 %v1711_v2  ;;  %1518 = vmatprep.mubr.msk.f32.mxu0 %vm1653_vm2, %v1652_v3 }
 0xdb0   :  { %1512 = vmatprep.subr.mxu0 %v1652_v3 }
 0xdb1   :  { %1513 = vmatpush3.msra.mxu0 %v1719_v4 }
 0xdb2   :  { %1514 = vmatprep.subr.mxu0 %v1652_v3 }
 0xdb3   :  { %1515 = vmatpush3.msra.mxu0 %v1731_v6 }
 0xdb4   :  { %1516 = vmatprep.subr.mxu0 %v1652_v3 }
 0xdb5   :  { %1517 = vmatpush3.msra.mxu0 %v1745_v8  ;;  %v857_v8 = vrot.slane %v763_v43, 6 }
 0xdb6   :  { %1532 = vmatprep.subr.mxu0 %v1652_v3 }
 0xe6e   :  { %v841_v52 = vpop.f32.mrf.mxu0 }
 0xe6f   :  { %v846_v53 = vrot.slane %v841_v52, 6 }
 0xe70   :  { %v1498_v2 = vpop.f32.mrf.mxu0 }
 0xe71   :  { %v848_v54 = vadd.f32 %v846_v53, %v1876_v57  ;;  %v1092_v53 = vld [vmem:[%s2032_s5 + $0x10] sm:$0xff]  ;;  %v1091_v2 = vld [vmem:[%s2032_s5 + $0x8] sm:$0xff] }
 0xe73   :  { %1591 = vtanh.f32 %v848_v54  ;;  %v1358_v4 = vmul.f32 -1.442695, %v848_v54  ;;  %v1090_v54 = vld [vmem:[%s2032_s5] sm:$0xff] }
 0xe75   :  { %1593 = vpow2.f32 %v1358_v4 }
 0xe80   :  { %v1592_v55 = vpop.eup %1591 }
 0xe81   :  { %861 = vrot.lane.b32.xlu0 %v1592_v55, %s1654_s3 }
 0xe82   :  { %v1594_v56 = vpop.eup %1593 }
 0xe83   :  { %v852_v58 = vadd.f32 1.0, %v1594_v56 }
 0xe85   :  { %1595 = vrcp.f32 %v852_v58 }
 0xe92   :  { %v1596_v6 = vpop.eup %1595 }
 0xe93   :  { %v859_v62 = vmul.f32 %v1596_v6, %v857_v8  ;;  %v1363_v8 = vld [vmem:[%s2033_s6] ss:$0 sm:$0xff] }
 0xef3   :  { %v862_v60 = vpop.permute.xlu0 %861 }
 0xef4   :  { %v864_v61 = vmul.f32 %v1596_v6, %v862_v60 }
 0xef6   :  { %866 = vrot.lane.b32.xlu1 %v864_v61, %s1655_s4 }
 0xf68   :  { %v867_v63 = vpop.permute.xlu1 %866 }
 0xf69   :  { %v869_v0 = vadd.f32 %v867_v63, %v859_v62 }
 0xf6b   :  { %1597 = vtanh.f32 %v869_v0  ;;  %v964_v25 = vrot.slane %v869_v0, 6 }
 0xf78   :  { %v1598_v1 = vpop.eup %1597 }
 0xf79   :  { %872 = vrot.lane.b32.xlu0 %v1598_v1, %s1654_s3 }
 0xfeb   :  { %v873_v5 = vpop.permute.xlu0 %872 }
 0xfec   :  { %v875_v7 = vmul.f32 %v1596_v6, %v873_v5 }
 0xfee   :  { %v1103_v9 = vrot.slane %v875_v7, 5  ;;  %v1209_v10 = vrot.slane %v875_v7, 6  ;;  %v877_v11 = vrot.slane %v875_v7, 2 }
 0xff0   :  { %878 = vrot.lane.b32.xlu1 %v877_v11, %s1655_s4  ;;  %v1217_v12 = vsel %vm138_vm5, %v1216_v49, %v1209_v10  ;;  %v1114_v13 = vsel %vm138_vm5, %v1113_v50, %v1103_v9 }
0x1062   :  { %v879_v14 = vpop.permute.xlu1 %878 }
0x1063   :  { %1508 = vmatmul.mubr.msk.f32.vlgmr.msra.gmra.mxu1 %vm162_vm8, %v879_v14 }
0x1064   :  { %1529 = vmatprep.mubr.msk.f32.mxu1 %vm1653_vm2, %v1652_v3 }
0x1123   :  { %v948_v15 = vpop.f32.mrf.mxu1 }
0x1124   :  { %v953_v16 = vrot.slane %v948_v15, 4 }
0x1125   :  { %v1509_v17 = vpop.f32.mrf.mxu1 }
0x1126   :  { %v955_v18 = vadd.f32 %v953_v16, %v1876_v57 }
0x1128   :  { %1599 = vtanh.f32 %v955_v18  ;;  %v1360_v20 = vmul.f32 -1.442695, %v955_v18 }
0x112a   :  { %1601 = vpow2.f32 %v1360_v20 }
0x1135   :  { %v1600_v19 = vpop.eup %1599 }
0x1136   :  { %968 = vrot.lane.b32.xlu0 %v1600_v19, %s1654_s3 }
0x1137   :  { %v1602_v21 = vpop.eup %1601 }
0x1138   :  { %v959_v59 = vadd.f32 1.0, %v1602_v21 }
0x113a   :  { %1603 = vrcp.f32 %v959_v59 }
0x1147   :  { %v1604_v22 = vpop.eup %1603 }
0x1148   :  { %v966_v26 = vmul.f32 %v1604_v22, %v964_v25 }
0x11a8   :  { %v969_v23 = vpop.permute.xlu0 %968 }
0x11a9   :  { %v971_v24 = vmul.f32 %v1604_v22, %v969_v23 }
0x11ab   :  { %973 = vrot.lane.b32.xlu1 %v971_v24, %s1655_s4 }
0x121d   :  { %v974_v27 = vpop.permute.xlu1 %973 }
0x121e   :  { %v976_v28 = vadd.f32 %v974_v27, %v966_v26 }
0x1220   :  { %1605 = vtanh.f32 %v976_v28  ;;  %v1071_v49 = vrot.slane %v976_v28, 6 }
0x122d   :  { %v1606_v29 = vpop.eup %1605 }
0x122e   :  { %979 = vrot.lane.b32.xlu0 %v1606_v29, %s1654_s3 }
0x12a0   :  { %v980_v30 = vpop.permute.xlu0 %979 }
0x12a1   :  { %v982_v31 = vmul.f32 %v1604_v22, %v980_v30 }
0x12a3   :  { %v1105_v32 = vrot.slane %v982_v31, 6  ;;  %v1211_v33 = vrot.slane %v982_v31, 7  ;;  %v984_v34 = vrot.slane %v982_v31, 4 }
0x12a5   :  { %985 = vrot.lane.b32.xlu1 %v984_v34, %s1655_s4  ;;  %v1218_v35 = vsel %vm140_vm6, %v1217_v12, %v1211_v33  ;;  %v1115_v36 = vsel %vm140_vm6, %v1114_v13, %v1105_v32 }
0x1317   :  { %v986_v37 = vpop.permute.xlu1 %985 }
0x1318   :  { %1519 = vmatmul.mubr.msk.f32.vlgmr.msra.gmra.mxu0 %vm162_vm8, %v986_v37 }
0x1319   :  { %1540 = vmatprep.mubr.msk.f32.mxu0 %vm1653_vm2, %v1652_v3 }
0x13d8   :  { %v1055_v38 = vpop.f32.mrf.mxu0 }
0x13d9   :  { %v1060_v39 = vrot.slane %v1055_v38, 2 }
0x13da   :  { %v1520_v40 = vpop.f32.mrf.mxu0 }
0x13db   :  { %v1062_v41 = vadd.f32 %v1060_v39, %v1876_v57  ;;  %v1093_v57 = vld [vmem:[%s2032_s5 + $0x18] sm:$0xff] }
0x13dc   :  { %1533 = vmatpush3.msra.mxu0 %v1093_v57  ;;  %1522 = vmatpush3.msra.mxu1 %v1093_v57 }
0x13dd   :  { %1607 = vtanh.f32 %v1062_v41  ;;  %v1362_v43 = vmul.f32 -1.442695, %v1062_v41  ;;  %1534 = vmatprep.subr.mxu0 %v1652_v3  ;;  %1523 = vmatprep.subr.mxu1 %v1652_v3 }
0x13de   :  { %1535 = vmatpush3.msra.mxu0 %v1092_v53  ;;  %1524 = vmatpush3.msra.mxu1 %v1092_v53 }
0x13df   :  { %1609 = vpow2.f32 %v1362_v43  ;;  %1536 = vmatprep.subr.mxu0 %v1652_v3  ;;  %1525 = vmatprep.subr.mxu1 %v1652_v3 }
0x13e0   :  { %1537 = vmatpush3.msra.mxu0 %v1091_v2  ;;  %1526 = vmatpush3.msra.mxu1 %v1091_v2 }
0x13e1   :  { %1538 = vmatprep.subr.mxu0 %v1652_v3  ;;  %1527 = vmatprep.subr.mxu1 %v1652_v3 }
0x13e2   :  { %1539 = vmatpush3.msra.mxu0 %v1090_v54  ;;  %1528 = vmatpush3.msra.mxu1 %v1090_v54 }
0x13ea   :  { %v1608_v42 = vpop.eup %1607 }
0x13eb   :  { %1075 = vrot.lane.b32.xlu0 %v1608_v42, %s1654_s3 }
0x13ec   :  { %v1610_v44 = vpop.eup %1609 }
0x13ed   :  { %v1066_v45 = vadd.f32 1.0, %v1610_v44 }
0x13ef   :  { %1611 = vrcp.f32 %v1066_v45 }
0x13fc   :  { %v1612_v46 = vpop.eup %1611 }
0x13fd   :  { %v1073_v50 = vmul.f32 %v1612_v46, %v1071_v49 }
0x145d   :  { %v1076_v47 = vpop.permute.xlu0 %1075 }
0x145e   :  { %v1078_v48 = vmul.f32 %v1612_v46, %v1076_v47 }
0x1460   :  { %1080 = vrot.lane.b32.xlu1 %v1078_v48, %s1655_s4 }
0x14d2   :  { %v1081_v51 = vpop.permute.xlu1 %1080 }
0x14d3   :  { %v1083_v52 = vadd.f32 %v1081_v51, %v1073_v50 }
0x14d5   :  { %1613 = vtanh.f32 %v1083_v52 }
0x14e2   :  { %v1614_v55 = vpop.eup %1613 }
0x14e3   :  { %1086 = vrot.lane.b32.xlu0 %v1614_v55, %s1654_s3 }
0x1555   :  { %v1087_v4 = vpop.permute.xlu0 %1086 }
0x1556   :  { %v1089_v56 = vmul.f32 %v1612_v46, %v1087_v4 }
0x1558   :  { %v1108_v58 = vrot.slane %v1089_v56, 7  ;;  %v1219_v6 = vsel %vm142_vm7, %v1218_v35, %v1089_v56 }
0x1559   :  { %1221 = vrot.lane.b32.xlu0 %v1219_v6, %s1655_s4 }
0x155a   :  { %v1116_v60 = vsel %vm142_vm7, %v1115_v36, %v1108_v58 }
0x155b   :  { %1124 = vrot.lane.b32.xlu1 %v1116_v60, %s1655_s4 }
0x15cb   :  { %v1222_v61 = vpop.permute.xlu0 %1221 }
0x15cc   :  { %1541 = vmatmul.mubr.msk.f32.vlgmr.msra.gmra.mxu0 %vm162_vm8, %v1222_v61 }
0x15cd   :  { %v1125_v3 = vpop.permute.xlu1 %1124 }
0x15ce   :  { %1530 = vmatmul.mubr.msk.f32.vlgmr.msra.gmra.mxu1 %vm162_vm8, %v1125_v3 }
0x168c   :  { %v1291_v62 = vpop.f32.mrf.mxu0 }
0x168d   :  { %v1292_v63 = vadd.f32 %v1363_v8, %v1291_v62 }
0x168e   :  { %v1194_v0 = vpop.f32.mrf.mxu1  ;;  %v1542_v1 = vpop.f32.mrf.mxu0 }
0x168f   :  { %1296 = vst.msk [vmem:[#allocation5 + $0x8] sm:$0xff] %vm1198_vm9, %v1292_v63  ;;  %v1195_v5 = vadd.f32 %v1363_v8, %v1194_v0 }
0x1690   :  { %v1531_v7 = vpop.f32.mrf.mxu1 }
0x1691   :  { %1199 = vst.msk [vmem:[#allocation5] sm:$0xff] %vm1198_vm9, %v1195_v5 }
0x1692   :  { %1638 = shalt.err (!%p1635_p9)
}
0x1693   :  { %s1657_s6 = smov 128   ;;  %s1658_s22 = smov 8  }
0x1694   :  { %1308 = dma.vmem_to_hbm [thread:$0]  %s1303_s20, 256, %s2034_s7, [#allocation3], %s1657_s6, %s1657_s6, %s1658_s22  }
0x1695   :  { %1649 = dma.done.wait [#allocation3], 256  }
0x1696   :  { %1650 = vsyncadd [#allocation3], 4294967040 }
0x1697   :  { %1312 = vsyncpa [#allocation3], 1 }
0x1698   :  { %1313 = vsyncpa [#allocation4], 1 }

</bundles_post_ra>
